<compile_context>
chip_gen: v7x
topology: tpu7x:2x2x1
jax: 0.10.0
libtpu: 0.0.40
codegen_flags: <defaults>
</compile_context>

<pallas_src>
import functools

import jax
import jax.numpy as jnp
from jax.experimental import pallas as pl
from jax.experimental.pallas import tpu as pltpu

BN_EPS = 1e-3  # nn.BatchNorm2d(..., eps=0.001)


def _blaze_kernel_s1(x_ref, halo_ref, lhs_ref, bias_ref, mask_ref, out_ref,
                     xp_ref, rhs_ref, *, W, TH, Cin, PAD):
    """stride == 1.  One (batch, row-tile) grid step.

    x_ref    : (1, Cin, TH*W)        current row tile, flattened
    halo_ref : (1, 1, Cin, 2*W)      row above | row below the tile (zeros at image border)
    lhs_ref  : (Cout, 9*Cin) bf16    folded dw x pw x BN weights (+ residual on center diag)
    bias_ref : (Cout, 1)             folded bias
    mask_ref : (2, TH*W)             left / right column-boundary masks
    xp_ref   : (Cin, PAD+TH*W+PAD)   scratch: halo-padded flattened tile
    rhs_ref  : (9*Cin, TH*W)         scratch: stacked shifted taps (matmul RHS)
    """
    TW = TH * W
    x = x_ref[0]                                            # (Cin, TW)
    # Assemble the halo buffer: [ ... | prev row | tile | next row | ... ].  Only two
    # single columns outside the written window are ever read (and those reads are
    # masked); zero them so stale VMEM can never poison the masked multiply (0*NaN=NaN).
    xp_ref[:, PAD - W - 1:PAD - W] = jnp.zeros((Cin, 1), jnp.float32)
    xp_ref[:, PAD + TW + W:PAD + TW + W + 1] = jnp.zeros((Cin, 1), jnp.float32)
    xp_ref[:, PAD - W:PAD] = halo_ref[0, 0, :, 0:W]
    xp_ref[:, PAD + TW:PAD + TW + W] = halo_ref[0, 0, :, W:2 * W]
    # TODO(synk): VMEM->VMEM body copy; a manual DMA of x straight into xp would avoid it.
    xp_ref[:, PAD:PAD + TW] = x

    mask_l = mask_ref[0:1, :]                               # zeros where col == 0
    mask_r = mask_ref[1:2, :]                               # zeros where col == W-1
    # Stack the 9 shifted / column-masked taps into the matmul RHS.
    for t in range(9):
        kr, kc = divmod(t, 3)
        if t == 4:
            src = x                                         # center tap: no shift
        else:
            off = PAD + (kr - 1) * W + (kc - 1)
            src = xp_ref[:, off:off + TW]
        if kc == 0:
            src = src * mask_l
        elif kc == 2:
            src = src * mask_r
        rhs_ref[t * Cin:(t + 1) * Cin, :] = src

    # Depthwise + pointwise + BN + residual in one MXU matmul, then bias + ReLU,
    # one full lane/sublane-dense store.
    y = jnp.dot(lhs_ref[...], rhs_ref[...].astype(jnp.bfloat16),
                preferred_element_type=jnp.float32)
    out_ref[0] = jnp.maximum(y + bias_ref[...], 0.0)


def _blaze_kernel_s2(s00_ref, s01_ref, s10_ref, s11_ref, lhs_ref, bias_ref, mask_ref,
                     out_ref, rhs_ref, *, Wo, HW, Cin):
    """stride == 2: inputs are the four parity planes x[:, :, p::2, q::2] flattened to
    (Cin, Ho*Wo) with (Wo+1) trailing zeros (so the +1 / +Wo / +Wo+1 shifted taps of the
    bottom/right-padded strided conv read zeros at the image border)."""
    mask_r = mask_ref[0:1, :]                               # zeros where col == Wo-1
    s00 = s00_ref[0, :, 0:HW]
    s01 = s01_ref[0, :, 0:HW]
    s10 = s10_ref[0, :, 0:HW]
    s11 = s11_ref[0, :, 0:HW]
    blocks = (
        s00,                                                # tap (0,0)
        s01,                                                # tap (0,1)
        s00_ref[0, :, 1:1 + HW] * mask_r,                   # tap (0,2)
        s10,                                                # tap (1,0)
        s11,                                                # tap (1,1)
        s10_ref[0, :, 1:1 + HW] * mask_r,                   # tap (1,2)
        s00_ref[0, :, Wo:Wo + HW],                          # tap (2,0)
        s01_ref[0, :, Wo:Wo + HW],                          # tap (2,1)
        s00_ref[0, :, Wo + 1:Wo + 1 + HW] * mask_r,         # tap (2,2)
        jnp.maximum(jnp.maximum(s00, s01), jnp.maximum(s10, s11)),  # 2x2 max-pool residual
    )
    for t, blk in enumerate(blocks):
        rhs_ref[t * Cin:(t + 1) * Cin, :] = blk
    y = jnp.dot(lhs_ref[...], rhs_ref[...].astype(jnp.bfloat16),
                preferred_element_type=jnp.float32)
    out_ref[0] = jnp.maximum(y + bias_ref[...], 0.0)


def _pick_row_tile(H, W, Cin, row_tile_h):
    """Largest divisor of H whose flattened tile is lane-dense (multiple of 128) and whose
    (9*Cin, TH*W) f32 RHS scratch stays under ~4 MiB (keeps v7x's 64 MiB VMEM happy)."""
    if row_tile_h is not None:
        assert H % row_tile_h == 0
        assert row_tile_h == H or (row_tile_h * W) % 128 == 0, \
            "row tile must keep TH*W a multiple of 128 lanes"
        return row_tile_h
    budget = 4 << 20
    max_th = max(1, budget // (9 * Cin * W * 4))
    cands = [d for d in range(1, H + 1)
             if H % d == 0 and (d == H or (d * W) % 128 == 0)]
    fitting = [d for d in cands if d <= max_th]
    return max(fitting) if fitting else min(cands)


def blaze_block(x, params, *, stride=1, kernel_size=3, row_tile_h=None):
    """x: (N, Cin, H, W) float32 (NCHW, as in PyTorch). Returns (N, Cout, Ho, Wo)."""
    assert kernel_size == 3, "BlazeBlock kernel implemented for kernel_size=3"
    wdw, bdw, wpw, bpw, gamma, beta, mean, var = params
    N, Cin, H, W = x.shape
    Cout = wpw.shape[1]
    assert Cout >= Cin

    # Fold BatchNorm (eval), both conv biases, the pointwise conv and the depthwise taps
    # into one matmul LHS + one bias vector.
    scale = gamma * jax.lax.rsqrt(var + BN_EPS)                        # (Cout,)
    a_fold = (wpw * scale[None, :]).T                                  # (Cout, Cin)
    b_fold = (bdw @ wpw + bpw - mean) * scale + beta                   # (Cout,)
    taps = wdw.reshape(9, Cin)                                         # tap t = kr*3 + kc
    lhs = a_fold[:, None, :] * taps[None, :, :]                        # (Cout, 9, Cin)
    res_blk = jnp.concatenate(
        [jnp.diag(scale[:Cin]),
         jnp.zeros((Cout - Cin, Cin), jnp.float32)], axis=0)           # residual * BN scale
    bias = b_fold[:, None].astype(jnp.float32)                         # (Cout, 1)

    if stride == 1:
        Ho, Wo = H, W
        # Channel-pad identity residual folds onto the center-tap diagonal.
        lhs = lhs.at[:, 4, :].add(res_blk).reshape(Cout, 9 * Cin).astype(jnp.bfloat16)
        TH = _pick_row_tile(H, W, Cin, row_tile_h)
        RT = H // TH
        TW = TH * W
        PAD = ((W + 1 + 127) // 128) * 128                 # lane-aligned halo columns
        col = jnp.arange(TW, dtype=jnp.int32) % W
        masks = jnp.stack([col != 0, col != W - 1]).astype(jnp.float32)    # (2, TW)
        x_flat = x.reshape(N, Cin, H * W).astype(jnp.float32)              # free reshape
        # One row of halo above/below each tile (zeros at the image border): a tiny
        # wrapper-built array so every kernel input is a plain BlockSpec window.
        xpad_h = jnp.pad(x, ((0, 0), (0, 0), (1, 1), (0, 0)))
        halo_top = xpad_h[:, :, 0:H:TH, :]                                 # (N, Cin, RT, W)
        halo_bot = xpad_h[:, :, TH + 1:H + 2:TH, :]                        # (N, Cin, RT, W)
        halos = jnp.transpose(jnp.concatenate([halo_top, halo_bot], axis=-1),
                              (0, 2, 1, 3)).astype(jnp.float32)            # (N, RT, Cin, 2W)

        grid = (N, RT)
        data = (x_flat, halos, lhs, bias, masks)
        in_specs = [
            pl.BlockSpec((1, Cin, TW), lambda n, r: (n, 0, r)),
            pl.BlockSpec((1, 1, Cin, 2 * W), lambda n, r: (n, r, 0, 0)),
            pl.BlockSpec((Cout, 9 * Cin), lambda n, r: (0, 0)),
            pl.BlockSpec((Cout, 1), lambda n, r: (0, 0)),
            pl.BlockSpec((2, TW), lambda n, r: (0, 0)),
        ]
        out_spec = pl.BlockSpec((1, Cout, TW), lambda n, r: (n, 0, r))
        kern = functools.partial(_blaze_kernel_s1, W=W, TH=TH, Cin=Cin, PAD=PAD)
        scratch = [pltpu.VMEM((Cin, PAD + TW + PAD), jnp.float32),
                   pltpu.VMEM((9 * Cin, TW), jnp.float32)]
        dim_sem = ("parallel", "parallel")
    elif stride == 2:
        assert H % 2 == 0 and W % 2 == 0
        Ho, Wo = H // 2, W // 2
        HW = Ho * Wo
        tail = Wo + 1
        # The max-pool residual is not linear -> it gets its own LHS column block that
        # multiplies the max-pool plane (10th RHS block).
        lhs = jnp.concatenate([lhs.reshape(Cout, 9 * Cin), res_blk],
                              axis=1).astype(jnp.bfloat16)               # (Cout, 10*Cin)

        # TODO(synk): this parity split (+ tail pad) costs one XLA pass over x in HBM; an
        # in-kernel strided DMA deinterleave would remove it (biggest win on v5e).
        def parity(p, q):
            s = x[:, :, p::2, q::2].reshape(N, Cin, HW).astype(jnp.float32)
            return jnp.pad(s, ((0, 0), (0, 0), (0, tail)))

        col = jnp.arange(HW, dtype=jnp.int32) % Wo
        masks = (col != Wo - 1).astype(jnp.float32)[None, :]              # (1, HW)

        grid = (N,)
        data = (parity(0, 0), parity(0, 1), parity(1, 0), parity(1, 1), lhs, bias, masks)
        in_specs = [pl.BlockSpec((1, Cin, HW + tail), lambda n: (n, 0, 0))] * 4 + [
            pl.BlockSpec((Cout, 10 * Cin), lambda n: (0, 0)),
            pl.BlockSpec((Cout, 1), lambda n: (0, 0)),
            pl.BlockSpec((1, HW), lambda n: (0, 0)),
        ]
        out_spec = pl.BlockSpec((1, Cout, HW), lambda n: (n, 0, 0))
        kern = functools.partial(_blaze_kernel_s2, Wo=Wo, HW=HW, Cin=Cin)
        scratch = [pltpu.VMEM((10 * Cin, HW), jnp.float32)]
        dim_sem = ("parallel",)
        # TODO(synk): add an output row-tile grid axis (like stride=1) for large Ho*Wo.
    else:
        raise ValueError("stride must be 1 or 2")

    out_flat = pl.pallas_call(
        kern,
        out_shape=jax.ShapeDtypeStruct((N, Cout, Ho * Wo), jnp.float32),
        grid=grid,
        in_specs=in_specs,
        out_specs=out_spec,
        scratch_shapes=scratch,
        compiler_params=pltpu.CompilerParams(
            dimension_semantics=dim_sem,
            vmem_limit_bytes=32 * 1024 * 1024),
    )(*data)
    # Metadata-only reshape back to NCHW spatial dims (no data movement).
    return out_flat.reshape(N, Cout, Ho, Wo)


def blaze_block_ref(x, params, *, stride=1):
    """Pure-JAX (XLA conv) reference of the PyTorch forward, eval-mode BN."""
    wdw, bdw, wpw, bpw, gamma, beta, mean, var = params
    N, Cin, H, W = x.shape
    Cout = wpw.shape[1]
    wdw_oihw = jnp.transpose(wdw, (2, 0, 1))[:, None, :, :]       # (Cin, 1, 3, 3)
    wpw_oihw = jnp.transpose(wpw, (1, 0))[:, :, None, None]       # (Cout, Cin, 1, 1)
    if stride == 2:
        h = jnp.pad(x, ((0, 0), (0, 0), (0, 2), (0, 2)))
        skip = jax.lax.reduce_window(x, -jnp.inf, jax.lax.max,
                                     (1, 1, 2, 2), (1, 1, 2, 2), "VALID")
        conv_pad = "VALID"
    else:
        h = x
        skip = x
        conv_pad = [(1, 1), (1, 1)]
    dw = jax.lax.conv_general_dilated(h, wdw_oihw, (stride, stride), conv_pad,
                                      feature_group_count=Cin,
                                      dimension_numbers=("NCHW", "OIHW", "NCHW"))
    dw = dw + bdw[None, :, None, None]
    pw = jax.lax.conv_general_dilated(dw, wpw_oihw, (1, 1), "VALID",
                                      dimension_numbers=("NCHW", "OIHW", "NCHW"))
    pw = pw + bpw[None, :, None, None]
    if Cout > Cin:
        skip = jnp.pad(skip, ((0, 0), (0, Cout - Cin), (0, 0), (0, 0)))
    out = pw + skip
    cb = lambda a: a[None, :, None, None]
    out = (out - cb(mean)) * jax.lax.rsqrt(cb(var) + BN_EPS) * cb(gamma) + cb(beta)
    return jnp.maximum(out, 0.0)


def make_params(key, Cin, Cout):
    ks = jax.random.split(key, 8)
    wdw = 0.2 * jax.random.normal(ks[0], (3, 3, Cin), jnp.float32)   # depthwise (k,k,Cin)
    bdw = 0.1 * jax.random.normal(ks[1], (Cin,), jnp.float32)
    wpw = 0.2 * jax.random.normal(ks[2], (Cin, Cout), jnp.float32)   # pointwise (Cin,Cout)
    bpw = 0.1 * jax.random.normal(ks[3], (Cout,), jnp.float32)
    gamma = 1.0 + 0.1 * jax.random.normal(ks[4], (Cout,), jnp.float32)
    beta = 0.1 * jax.random.normal(ks[5], (Cout,), jnp.float32)
    mean = 0.1 * jax.random.normal(ks[6], (Cout,), jnp.float32)
    var = 0.5 + jnp.abs(jax.random.normal(ks[7], (Cout,), jnp.float32))
    return (wdw, bdw, wpw, bpw, gamma, beta, mean, var)


if __name__ == "__main__":
    N, Cin, Cout, H, W = 2, 4, 8, 16, 16
    key = jax.random.PRNGKey(0)
    kx, kp = jax.random.split(key)
    x = jax.random.normal(kx, (N, Cin, H, W), jnp.float32)
    params = make_params(kp, Cin, Cout)

    # (stride, stride-1 row tile): exercises single-tile, multi-row-tile, and stride-2 paths.
    cases = ((1, None), (1, 8), (2, None))
    for stride, row_tile in cases:
        out = jax.block_until_ready(
            blaze_block(x, params, stride=stride, row_tile_h=row_tile))
        ref = blaze_block_ref(x, params, stride=stride)
        assert out.shape == ref.shape, (out.shape, ref.shape)
        # All matmul operands (folded weights, shifted activations, residual diagonal) are
        # bf16 on the MXU with f32 accumulation -> deliberately relaxed tolerance.
        assert jnp.allclose(out, ref, atol=6e-2, rtol=5e-2), \
            f"mismatch at stride={stride}, row_tile={row_tile}"
    print("KERNEL_OK")
</pallas_src>

<mosaic_0001>
module attributes {stable_mosaic.version = 11 : i64} {
  func.func @_blaze_kernel_s1(%arg0: i32, %arg1: i32, %arg2: memref<1x4x256xf32, #tpu.memory_space<vmem>>, %arg3: memref<1x1x4x32xf32, #tpu.memory_space<vmem>>, %arg4: memref<8x36xbf16, #tpu.memory_space<vmem>>, %arg5: memref<8x1xf32, #tpu.memory_space<vmem>>, %arg6: memref<2x256xf32, #tpu.memory_space<vmem>>, %arg7: memref<1x8x256xf32, #tpu.memory_space<vmem>>, %arg8: memref<4x512xf32, #tpu.memory_space<vmem>>, %arg9: memref<36x256xf32, #tpu.memory_space<vmem>>) attributes {dimension_semantics = [#tpu.dimension_semantics<parallel>, #tpu.dimension_semantics<parallel>], iteration_bounds = array<i64: 2, 1>, scalar_prefetch = 0 : i64, scratch_operands = 2 : i64, tpu.core_type = #tpu.core_type<tc>, window_params = [{transform_indices = @transform_0, window_bounds = array<i64: 1, 4, 256>}, {transform_indices = @transform_1, window_bounds = array<i64: 1, 1, 4, 32>}, {pipeline_mode = #tpu.pipeline_mode<synchronous>, transform_indices = @transform_2, window_bounds = array<i64: 8, 36>}, {pipeline_mode = #tpu.pipeline_mode<synchronous>, transform_indices = @transform_3, window_bounds = array<i64: 8, 1>}, {pipeline_mode = #tpu.pipeline_mode<synchronous>, transform_indices = @transform_4, window_bounds = array<i64: 2, 256>}, {transform_indices = @transform_5, window_bounds = array<i64: 1, 8, 256>}]} {
    %c0 = arith.constant 0 : index
    %c0_0 = arith.constant 0 : index
    %c0_1 = arith.constant 0 : index
    %0 = vector.load %arg2[%c0, %c0_0, %c0_1] : memref<1x4x256xf32, #tpu.memory_space<vmem>>, vector<1x4x256xf32>
    %1 = vector.shape_cast %0 : vector<1x4x256xf32> to vector<4x256xf32>
    %cst = arith.constant 0.000000e+00 : f32
    %2 = vector.broadcast %cst : f32 to vector<4x1xf32>
    %c0_2 = arith.constant 0 : index
    %c111 = arith.constant 111 : index
    %3 = vector.load %arg8[%c0_2, %c111] : memref<4x512xf32, #tpu.memory_space<vmem>>, vector<4x1xf32>
    tpu.vector_store %arg8[%c0_2, %c111], %2 {strides = array<i32>} : memref<4x512xf32, #tpu.memory_space<vmem>>, vector<4x1xf32>,
    %cst_3 = arith.constant 0.000000e+00 : f32
    %4 = vector.broadcast %cst_3 : f32 to vector<4x1xf32>
    %c0_4 = arith.constant 0 : index
    %c400 = arith.constant 400 : index
    %5 = vector.load %arg8[%c0_4, %c400] : memref<4x512xf32, #tpu.memory_space<vmem>>, vector<4x1xf32>
    tpu.vector_store %arg8[%c0_4, %c400], %4 {strides = array<i32>} : memref<4x512xf32, #tpu.memory_space<vmem>>, vector<4x1xf32>,
    %c0_5 = arith.constant 0 : index
    %c0_6 = arith.constant 0 : index
    %c0_7 = arith.constant 0 : index
    %c0_8 = arith.constant 0 : index
    %6 = vector.load %arg3[%c0_5, %c0_6, %c0_7, %c0_8] : memref<1x1x4x32xf32, #tpu.memory_space<vmem>>, vector<1x1x4x16xf32>
    %7 = vector.shape_cast %6 : vector<1x1x4x16xf32> to vector<4x16xf32>
    %c0_9 = arith.constant 0 : index
    %c112 = arith.constant 112 : index
    %8 = vector.load %arg8[%c0_9, %c112] : memref<4x512xf32, #tpu.memory_space<vmem>>, vector<4x16xf32>
    tpu.vector_store %arg8[%c0_9, %c112], %7 {strides = array<i32>} : memref<4x512xf32, #tpu.memory_space<vmem>>, vector<4x16xf32>,
    %c0_10 = arith.constant 0 : index
    %c0_11 = arith.constant 0 : index
    %c0_12 = arith.constant 0 : index
    %c16 = arith.constant 16 : index
    %9 = vector.load %arg3[%c0_10, %c0_11, %c0_12, %c16] : memref<1x1x4x32xf32, #tpu.memory_space<vmem>>, vector<1x1x4x16xf32>
    %10 = vector.shape_cast %9 : vector<1x1x4x16xf32> to vector<4x16xf32>
    %c0_13 = arith.constant 0 : index
    %c384 = arith.constant 384 : index
    %11 = vector.load %arg8[%c0_13, %c384] : memref<4x512xf32, #tpu.memory_space<vmem>>, vector<4x16xf32>
    tpu.vector_store %arg8[%c0_13, %c384], %10 {strides = array<i32>} : memref<4x512xf32, #tpu.memory_space<vmem>>, vector<4x16xf32>,
    %c0_14 = arith.constant 0 : index
    %c128 = arith.constant 128 : index
    %12 = vector.load %arg8[%c0_14, %c128] : memref<4x512xf32, #tpu.memory_space<vmem>>, vector<4x256xf32>
    tpu.vector_store %arg8[%c0_14, %c128], %1 {strides = array<i32>} : memref<4x512xf32, #tpu.memory_space<vmem>>, vector<4x256xf32>,
    %c0_15 = arith.constant 0 : index
    %c0_16 = arith.constant 0 : index
    %13 = vector.load %arg6[%c0_15, %c0_16] : memref<2x256xf32, #tpu.memory_space<vmem>>, vector<1x256xf32>
    %c1 = arith.constant 1 : index
    %c0_17 = arith.constant 0 : index
    %14 = vector.load %arg6[%c1, %c0_17] : memref<2x256xf32, #tpu.memory_space<vmem>>, vector<1x256xf32>
    %c0_18 = arith.constant 0 : index
    %c111_19 = arith.constant 111 : index
    %15 = vector.load %arg8[%c0_18, %c111_19] : memref<4x512xf32, #tpu.memory_space<vmem>>, vector<4x256xf32>
    %16 = vector.broadcast %13 : vector<1x256xf32> to vector<4x256xf32>
    %17 = arith.mulf %15, %16 : vector<4x256xf32>
    %c0_20 = arith.constant 0 : index
    %c0_21 = arith.constant 0 : index
    %18 = vector.load %arg9[%c0_20, %c0_21] : memref<36x256xf32, #tpu.memory_space<vmem>>, vector<4x256xf32>
    tpu.vector_store %arg9[%c0_20, %c0_21], %17 {strides = array<i32>} : memref<36x256xf32, #tpu.memory_space<vmem>>, vector<4x256xf32>,
    %c0_22 = arith.constant 0 : index
    %c112_23 = arith.constant 112 : index
    %19 = vector.load %arg8[%c0_22, %c112_23] : memref<4x512xf32, #tpu.memory_space<vmem>>, vector<4x256xf32>
    %c4 = arith.constant 4 : index
    %c0_24 = arith.constant 0 : index
    %20 = vector.load %arg9[%c4, %c0_24] : memref<36x256xf32, #tpu.memory_space<vmem>>, vector<4x256xf32>
    tpu.vector_store %arg9[%c4, %c0_24], %19 {strides = array<i32>} : memref<36x256xf32, #tpu.memory_space<vmem>>, vector<4x256xf32>,
    %c0_25 = arith.constant 0 : index
    %c113 = arith.constant 113 : index
    %21 = vector.load %arg8[%c0_25, %c113] : memref<4x512xf32, #tpu.memory_space<vmem>>, vector<4x256xf32>
    %22 = vector.broadcast %14 : vector<1x256xf32> to vector<4x256xf32>
    %23 = arith.mulf %21, %22 : vector<4x256xf32>
    %c8 = arith.constant 8 : index
    %c0_26 = arith.constant 0 : index
    %24 = vector.load %arg9[%c8, %c0_26] : memref<36x256xf32, #tpu.memory_space<vmem>>, vector<4x256xf32>
    tpu.vector_store %arg9[%c8, %c0_26], %23 {strides = array<i32>} : memref<36x256xf32, #tpu.memory_space<vmem>>, vector<4x256xf32>,
    %c0_27 = arith.constant 0 : index
    %c127 = arith.constant 127 : index
    %25 = vector.load %arg8[%c0_27, %c127] : memref<4x512xf32, #tpu.memory_space<vmem>>, vector<4x256xf32>
    %26 = vector.broadcast %13 : vector<1x256xf32> to vector<4x256xf32>
    %27 = arith.mulf %25, %26 : vector<4x256xf32>
    %c12 = arith.constant 12 : index
    %c0_28 = arith.constant 0 : index
    %28 = vector.load %arg9[%c12, %c0_28] : memref<36x256xf32, #tpu.memory_space<vmem>>, vector<4x256xf32>
    tpu.vector_store %arg9[%c12, %c0_28], %27 {strides = array<i32>} : memref<36x256xf32, #tpu.memory_space<vmem>>, vector<4x256xf32>,
    %c16_29 = arith.constant 16 : index
    %c0_30 = arith.constant 0 : index
    %29 = vector.load %arg9[%c16_29, %c0_30] : memref<36x256xf32, #tpu.memory_space<vmem>>, vector<4x256xf32>
    tpu.vector_store %arg9[%c16_29, %c0_30], %1 {strides = array<i32>} : memref<36x256xf32, #tpu.memory_space<vmem>>, vector<4x256xf32>,
    %c0_31 = arith.constant 0 : index
    %c129 = arith.constant 129 : index
    %30 = vector.load %arg8[%c0_31, %c129] : memref<4x512xf32, #tpu.memory_space<vmem>>, vector<4x256xf32>
    %31 = vector.broadcast %14 : vector<1x256xf32> to vector<4x256xf32>
    %32 = arith.mulf %30, %31 : vector<4x256xf32>
    %c20 = arith.constant 20 : index
    %c0_32 = arith.constant 0 : index
    %33 = vector.load %arg9[%c20, %c0_32] : memref<36x256xf32, #tpu.memory_space<vmem>>, vector<4x256xf32>
    tpu.vector_store %arg9[%c20, %c0_32], %32 {strides = array<i32>} : memref<36x256xf32, #tpu.memory_space<vmem>>, vector<4x256xf32>,
    %c0_33 = arith.constant 0 : index
    %c143 = arith.constant 143 : index
    %34 = vector.load %arg8[%c0_33, %c143] : memref<4x512xf32, #tpu.memory_space<vmem>>, vector<4x256xf32>
    %35 = vector.broadcast %13 : vector<1x256xf32> to vector<4x256xf32>
    %36 = arith.mulf %34, %35 : vector<4x256xf32>
    %c24 = arith.constant 24 : index
    %c0_34 = arith.constant 0 : index
    %37 = vector.load %arg9[%c24, %c0_34] : memref<36x256xf32, #tpu.memory_space<vmem>>, vector<4x256xf32>
    tpu.vector_store %arg9[%c24, %c0_34], %36 {strides = array<i32>} : memref<36x256xf32, #tpu.memory_space<vmem>>, vector<4x256xf32>,
    %c0_35 = arith.constant 0 : index
    %c144 = arith.constant 144 : index
    %38 = vector.load %arg8[%c0_35, %c144] : memref<4x512xf32, #tpu.memory_space<vmem>>, vector<4x256xf32>
    %c28 = arith.constant 28 : index
    %c0_36 = arith.constant 0 : index
    %39 = vector.load %arg9[%c28, %c0_36] : memref<36x256xf32, #tpu.memory_space<vmem>>, vector<4x256xf32>
    tpu.vector_store %arg9[%c28, %c0_36], %38 {strides = array<i32>} : memref<36x256xf32, #tpu.memory_space<vmem>>, vector<4x256xf32>,
    %c0_37 = arith.constant 0 : index
    %c145 = arith.constant 145 : index
    %40 = vector.load %arg8[%c0_37, %c145] : memref<4x512xf32, #tpu.memory_space<vmem>>, vector<4x256xf32>
    %41 = vector.broadcast %14 : vector<1x256xf32> to vector<4x256xf32>
    %42 = arith.mulf %40, %41 : vector<4x256xf32>
    %c32 = arith.constant 32 : index
    %c0_38 = arith.constant 0 : index
    %43 = vector.load %arg9[%c32, %c0_38] : memref<36x256xf32, #tpu.memory_space<vmem>>, vector<4x256xf32>
    tpu.vector_store %arg9[%c32, %c0_38], %42 {strides = array<i32>} : memref<36x256xf32, #tpu.memory_space<vmem>>, vector<4x256xf32>,
    %c0_39 = arith.constant 0 : index
    %c0_40 = arith.constant 0 : index
    %44 = vector.load %arg4[%c0_39, %c0_40] : memref<8x36xbf16, #tpu.memory_space<vmem>>, vector<8x36xbf16>
    %c0_41 = arith.constant 0 : index
    %c0_42 = arith.constant 0 : index
    %45 = vector.load %arg9[%c0_41, %c0_42] : memref<36x256xf32, #tpu.memory_space<vmem>>, vector<36x256xf32>
    %46 = arith.truncf %45 : vector<36x256xf32> to vector<36x256xbf16>
    %cst_43 = arith.constant dense<0.000000e+00> : vector<8x256xf32>
    %47 = tpu.matmul %44, %46, %cst_43 {dimension_numbers = #tpu.dot_dimension_numbers<[1], [0], [0], [1], [0, 0, 1, 1], [], []>} : vector<8x36xbf16>, vector<36x256xbf16>, vector<8x256xf32> -> vector<8x256xf32>
    %c0_44 = arith.constant 0 : index
    %c0_45 = arith.constant 0 : index
    %48 = vector.load %arg5[%c0_44, %c0_45] : memref<8x1xf32, #tpu.memory_space<vmem>>, vector<8x1xf32>
    %49 = vector.broadcast %48 : vector<8x1xf32> to vector<8x256xf32>
    %50 = arith.addf %47, %49 : vector<8x256xf32>
    %cst_46 = arith.constant 0.000000e+00 : f32
    %51 = vector.broadcast %cst_46 : f32 to vector<8x256xf32>
    %52 = arith.maximumf %50, %51 : vector<8x256xf32>
    %c0_47 = arith.constant 0 : index
    %c0_48 = arith.constant 0 : index
    %c0_49 = arith.constant 0 : index
    %53 = vector.load %arg7[%c0_47, %c0_48, %c0_49] : memref<1x8x256xf32, #tpu.memory_space<vmem>>, vector<1x8x256xf32>
    %54 = vector.shape_cast %53 : vector<1x8x256xf32> to vector<8x256xf32>
    %55 = vector.shape_cast %52 : vector<8x256xf32> to vector<1x8x256xf32>
    tpu.vector_store %arg7[%c0_47, %c0_48, %c0_49], %55 {strides = array<i32>} : memref<1x8x256xf32, #tpu.memory_space<vmem>>, vector<1x8x256xf32>,
    return
  }
  func.func @transform_0(%arg0: i32, %arg1: i32) -> (i32, i32, i32) {
    %c0_i32 = arith.constant 0 : i32
    %c0_i32_0 = arith.constant 0 : i32
    return %arg0, %c0_i32, %arg1 : i32, i32, i32
  }
  func.func @transform_1(%arg0: i32, %arg1: i32) -> (i32, i32, i32, i32) {
    %c0_i32 = arith.constant 0 : i32
    %c0_i32_0 = arith.constant 0 : i32
    %c0_i32_1 = arith.constant 0 : i32
    return %arg0, %arg1, %c0_i32, %c0_i32_0 : i32, i32, i32, i32
  }
  func.func @transform_2(%arg0: i32, %arg1: i32) -> (i32, i32) {
    %c0_i32 = arith.constant 0 : i32
    %c0_i32_0 = arith.constant 0 : i32
    %c0_i32_1 = arith.constant 0 : i32
    return %c0_i32, %c0_i32_0 : i32, i32
  }
  func.func @transform_3(%arg0: i32, %arg1: i32) -> (i32, i32) {
    %c0_i32 = arith.constant 0 : i32
    %c0_i32_0 = arith.constant 0 : i32
    %c0_i32_1 = arith.constant 0 : i32
    return %c0_i32, %c0_i32_0 : i32, i32
  }
  func.func @transform_4(%arg0: i32, %arg1: i32) -> (i32, i32) {
    %c0_i32 = arith.constant 0 : i32
    %c0_i32_0 = arith.constant 0 : i32
    %c0_i32_1 = arith.constant 0 : i32
    return %c0_i32, %c0_i32_0 : i32, i32
  }
  func.func @transform_5(%arg0: i32, %arg1: i32) -> (i32, i32, i32) {
    %c0_i32 = arith.constant 0 : i32
    %c0_i32_0 = arith.constant 0 : i32
    return %arg0, %c0_i32, %arg1 : i32, i32, i32
  }
}

</mosaic_0001>

<bundles_post_ra>
// kernel: tpu_custom_call.1
= control target key start
LH: loop header
LB: loop body
LE: loop exit
PB: predicated region body
PF: predicated region fallthrough
CT: control target
= control target key end

     0   :  { %10 = vsyncpa [#allocation5], 0  ;;  %s1235_s0 = inlined_call_operand.hbm [shape: f32[2,4,256], index: 0, kind: input, shape index: {}]   ;;  %s1236_s1 = inlined_call_operand.vmem [shape: f32[2,1,4,32], index: 1, kind: input, shape index: {}]   ;;  %s1237_s2 = inlined_call_operand.vmem [shape: bf16[8,36], index: 2, kind: input, shape index: {}]   ;;  %s1238_s3 = inlined_call_operand.vmem [shape: f32[8,1], index: 3, kind: input, shape index: {}]   ;;  %s1239_s4 = inlined_call_operand.vmem [shape: f32[2,256], index: 4, kind: input, shape index: {}]   ;;  %s1240_s5 = inlined_call_operand.hbm [shape: f32[2,8,256], index: 5, kind: output, shape index: {}]  }
   0x1   :  { %12 = vsyncpa [#allocation5 + $0x1], 0 }
   0x2   :  { %13 = vsyncpa [#allocation6], 0 }
   0x3   :  { %15 = vsyncpa [#allocation6 + $0x1], 0  ;;  %s981_s18 = smov 0   ;;  %s983_s19 = smov 0  }
   0x4   :  { %s985_s20 = smov 0   ;;  %s987_s21 = smov 0  }
   0x5   :  { %s989_s22 = smov 0   ;;  %s991_s23 = smov 0  }
   0x6 LB: > { %s729_s24 = sadd.s32 4294967295, %s937_s23   ;;  %s730_s25 = sadd.s32 4294967294, %s937_s23   ;;  %s937_s23 = sphi %s991_s23, %s21_s23   ;;  %s933_s22 = sphi %s989_s22, %s1256_s22   ;;  %s929_s21 = sphi %s987_s21, %s1255_s21   ;;  %s925_s20 = sphi %s985_s20, %s1254_s20   ;;  %s921_s19 = sphi %s983_s19, %s1253_s19   ;;  %s917_s18 = sphi %s981_s18, %s1252_s18  }
   0x7   : > { %s33_s26 = sadd.s32 1, %s933_s22  ;;  %s42_s27 = sadd.s32 1, %s925_s20 }
   0x8   : > { %p35_p0 = scmp.ge.s32.totalorder %s33_s26, 2  ;;  %p49_p1 = scmp.ne.s32.totalorder %s925_s20, %s921_s19 }
   0x9   : > { %p50_p2 = scmp.eq.s32.totalorder %s937_s23, 0  ;;  %p55_p3 = scmp.ne.s32.totalorder %s921_s19, %s917_s18 }
   0xa   : > { %s1258_s26 = smov (%p35_p0, %s33_s26), 0  ;;  %p56_p5 = scmp.eq.s32.totalorder %s729_s24, 0 }
   0xb   : > { %p1022_p4 = por %p50_p2, %p49_p1  ;;  %s37_s29 = ssub.s32 %s933_s22, %s1258_s26 }
   0xc   : > { %p172_p6 = scmp.eq.s32.totalorder %s729_s24, 1  ;;  %p40_p7 = scmp.eq.s32.totalorder %s37_s29, 0 }
   0xd   : > { %p1028_p8 = por %p56_p5, %p55_p3  ;;  %p178_p10 = scmp.eq.s32.totalorder %s730_s25, 1 }
   0xe   : > { %p1032_p9 = por %p172_p6, %p49_p1  ;;  %p762_p13 = scmp.lt.s32.totalorder %s937_s23, 2 }
   0xf   : > { %s1037_s7 = scalar_select %p40_p7, %s925_s20, %s42_s27  }
  0x10   : > { %s1244_s6 = scalar_select %p1032_p9, 1, 0 }
  0x11   : > { %p1039_p11 = por %p178_p10, %p55_p3  ;;  %s207_s9 = sand.u32 1, %s925_s20  }
  0x12   : > { %s733_s10 = sshll.u32 %s207_s9, 3  ;;  %s748_s11 = sshll.u32 %s933_s22, 7 }
  0x13   : > { %s1245_s8 = scalar_select %p1039_p11, 1, 0 }
  0x14   : > { %s1050_s14 = scalar_lea.hbm %s1235_s0, %s748_s11  ;;  %s211_s15 = scalar_lea.vmem [#allocation4], %s733_s10 }
  0x15   : > { %s221_s16 = sshll.u32 %s211_s15, 4  ;;  %p1056_p0 = pnand %p762_p13, %p1022_p4  ;;  %s1052_s16 = int_to_ptr.vmem [resolvable:$true] %s221_s16 }
  0x16   : > { %s208_s24 = scalar_lea.sflag [#allocation5], %s207_s9  ;;  %s825_s25 = scalar_lea.hbm %s1050_s14, 128 }
  0x17   : > { %p826_p3 = scmp.ne.s32.totalorder %s1050_s14, %s825_s25  ;;  %p827_p5 = pneg %p1056_p0 }
  0x18   : > { %s830_s28 = scalar_lea.hbm %s1235_s0, 256  ;;  %p831_p4 = scmp.lt.u32.totalorder %s1050_s14, %s1235_s0 }
  0x19   : > { %p828_p6 = pnand %p827_p5, %p826_p3  ;;  %p832_p10 = scmp.lt.u32.totalorder %s830_s28, %s825_s25 }
  0x1a   : > { %p834_p12 = scmp.lt.u32.totalorder %s825_s25, %s1050_s14 }
  0x1b   : > { %p829_p7 = pneg %p828_p6  ;;  %p833_p13 = por %p832_p10, %p831_p4 }
  0x1d   : > { %p835_p1 = por %p834_p12, %p833_p13 }
  0x1f   : > { %p836_p2 = pnand %p835_p1, %p829_p7 }
  0x21   : > { %839 = shalt.err (!%p836_p2)
}
  0x22   : > { %s840_s9 = scalar_lea.vmem %s1052_s16, 128  ;;  %s939_s12 = smov [#allocation4]  }
  0x23   : > { %p841_p3 = scmp.ne.s32.totalorder %s1052_s16, %s840_s9  ;;  %s845_s13 = sshll.u32 %s939_s12, 4  ;;  %s846_s13 = int_to_ptr.vmem [resolvable:$false] %s845_s13 }
  0x24   : > { %s847_s15 = scalar_lea.vmem %s846_s13, 256  ;;  %p848_p9 = scmp.lt.s32.totalorder %s1052_s16, %s846_s13 }
  0x25   : > { %p843_p6 = pnand %p841_p3, %p827_p5  ;;  %p849_p4 = scmp.lt.s32.totalorder %s847_s15, %s840_s9 }
  0x27   : > { %p844_p11 = pneg %p843_p6  ;;  %p850_p10 = por %p849_p4, %p848_p9 }
  0x29   : > { %p851_p12 = pnand %p850_p10, %p844_p11 }
  0x2b   : > { %854 = shalt.err (!%p851_p12)
}
  0x2c   : > { %757 = dma.hbm_to_vmem [thread:$0]  (!%p1056_p0), %s1050_s14, 128, %s1052_s16, %s208_s24  }
  0x2d   : > { %p1247_p1 = scmp.lt.s32.totalorder %s937_s23, 3  ;;  %p1248_p2 = scmp.ge.s32.totalorder %s937_s23, 1 }
  0x2f   : > { %p237_p5 = pnand %p1248_p2, %p1247_p1 }
  0x30   : > { %s1092_s25 = sand.u32 (!%p237_p5), 1, %s921_s19  }
  0x31   : > { %240 = sbr.rel (%p237_p5) target bundleno = 593 (0x251), region = 40  ;;  %s737_s27 = sshll.u32 (!%p237_p5), %s1092_s25, 3 }
  0x32   : > { %s243_s29 = scalar_lea.sflag (!%p237_p5), [#allocation5], %s1092_s25  ;;  %s246_s28 = scalar_lea.vmem (!%p237_p5), [#allocation4], %s737_s27 }
  0x38   : > { %908 = dma.done.wait (%p1028_p8), %s243_s29, 128  }
  0x39   : > { %910 = vsyncadd (%p1028_p8), %s243_s29, 4294967168  ;;  %p281_p9 = scmp.lt.s32.totalorder %s929_s21, 1  ;;  %v316_v0 = vlaneseq  ;;  %vm291_vm0 = vcmask 913272   ;;  %v940_v1 = vmov 0.0   ;;  %vm293_vm1 = vcmask 134272   ;;  %v1108_v7 = vld [vmem:[%s246_s28] sm:$0xff] }
  0x3a   : > { %292 = vst.msk [vmem:[#allocation2] sm:$0xf] %vm291_vm0, %v940_v1  ;;  %v310_v6 = vld [vmem:[%s1239_s4] ss:$2 sm:$0x3]  ;;  %s941_s9 = smov 112   ;;  %v435_v55 = vcombine.high %v1108_v7, %v1108_v7 }
  0x3b   : > { %s282_s14 = scalar_select %p281_p9, %s929_s21, 1  ;;  %v317_v2 = vshrl.u32 %v316_v0, 7  ;;  %294 = vst.msk [vmem:[#allocation2 + $0xc] sm:$0xf] %vm293_vm1, %v940_v1  ;;  %309 = vst [vmem:[#allocation2 + $0x4] sm:$0xff] %v1108_v7  ;;  %vm300_vm2 = vcmask 1044352   ;;  %v494_v0 = vcombine.low %v1108_v7, %v1108_v7 }
  0x3c   : > { %v740_v10 = vld [vmem:[%s1239_s4 + $0x1] ss:$2 sm:$0x3]  ;;  %437 = vst [vmem:[#allocation3 + $0x20] sm:$0xf] %v1108_v7  ;;  %s942_s15 = smov 111  }
  0x3d   : > { %s739_s16 = sshll.u32 %s282_s14, 2  ;;  %v318_v3 = vsub.s32 0, %v317_v2  ;;  %v322_v4 = vsub.s32 1, %v317_v2  ;;  %s943_s27 = smov 113   ;;  %vm307_vm3 = vcmask 125952   ;;  %vm399_vm4 = vcmask 121856  }
  0x3e   : > { %s287_s10 = scalar_lea.vmem %s1236_s1, %s739_s16  ;;  %s944_s29 = smov 127   ;;  %vm427_vm5 = vcmask 7168   ;;  %vm411_vm6 = vcmask 1039360   ;;  %vm328_vm7 = vcmask 908288   ;;  %vm384_vm8 = vcmask 924672  }
  0x3f   : > { %v295_v5 = vld [vmem:[%s287_s10] sm:$0xf]  ;;  %v319_v8 = vrot.slane %v310_v6, %v318_v3  ;;  %v323_v9 = vrot.slane %v310_v6, %v322_v4  ;;  %v375_v12 = vrot.slane %v740_v10, %v318_v3  ;;  %v379_v13 = vrot.slane %v740_v10, %v322_v4  ;;  %s945_s28 = smov 15   ;;  %s946_s14 = smov 1   ;;  %438 = vst [vmem:[#allocation3 + $0x28] sm:$0xf] %v435_v55 }
  0x40   : > { %297 = vrot.lane.b32.xlu0 %v295_v5, %s941_s9  ;;  %v302_v11 = vld [vmem:[%s287_s10] sm:$0xf]  ;;  %s947_s16 = smov 17   ;;  %s948_s17 = smov 16   ;;  %vm343_vm9 = vcmask 138240   ;;  %v949_v4 = vmov 0  }
  0x41   : > { %v324_v14 = vcombine.low %v319_v8, %v323_v9  ;;  %v380_v15 = vcombine.low %v375_v12, %v379_v13  ;;  %600 = vmatprep.mubr.bf16.mxu0 %v949_v4  ;;  %822 = vset.pattern.permute.xlu0 %v949_v4  ;;  %v551_v5 = vld [vmem:[%s1238_s3] sm:$0xff]  ;;  %vm362_vm10 = vcmask 130048   ;;  %vm502_vm11 = vcmask 916480   ;;  %s749_s12 = sshll.u32 %s929_s21, 8  ;;  %s614_s21 = scalar_lea.sflag [#allocation6], %s1092_s25 }
  0x42   : > { %v823_v16 = vld [vmem:[#allocation2 + $0x8] ss:$0 sps:$4 sm:$0xff]   ;;  %vm561_vm12 = vcmask 1041408   ;;  %vm557_vm13 = vcmask 293888   ;;  %p1249_p11 = scmp.ne.s32.totalorder %s1244_s6, 0 }
  0x43   : > { %325 = vrot.lane.b32.xlu1 %v324_v14, %s942_s15  ;;  %v314_v19 = vld [vmem:[#allocation2 + $0x8] sm:$0xf] }
  0x44   : > { %304 = vrot.lane.b32.xlu0 %v302_v11, %s941_s9  ;;  %v370_v25 = vld [vmem:[#allocation2 + $0x8] sm:$0xf] }
  0x45   : > { %v407_v32 = vld [vmem:[#allocation2 + $0x8] sm:$0xf] }
  0x47   : > { %381 = vrot.lane.b32.xlu1 %v380_v15, %s943_s27 }
  0x48   : > { %408 = vrot.lane.b32.xlu0 %v324_v14, %s944_s29 }
  0x4b   : > { %467 = vrot.lane.b32.xlu1 %v324_v14, %s945_s28 }
  0x4c   : > { %441 = vrot.lane.b32.xlu0 %v380_v15, %s946_s14 }
  0x4f   : > { %511 = vrot.lane.b32.xlu1 %v380_v15, %s947_s16 }
  0x50   : > { %498 = vrot.lane.b32.xlu0 %v1108_v7, %s941_s9 }
  0x53   : > { %360 = vrot.lane.b32.xlu1 %v823_v16, %s948_s17 }
  0xb2   : > { %v298_v17 = vpop.permute.xlu0 %297 }
  0xb3   : > { %301 = vst.msk [vmem:[#allocation2] sm:$0xf] %vm300_vm2, %v298_v17 }
  0xb5   : > { %v326_v18 = vpop.permute.xlu1 %325 }
  0xb6   : > { %v305_v20 = vpop.permute.xlu0 %304  ;;  %v327_v21 = vrot.slane %v326_v18, 4 }
  0xb7   : > { %308 = vst.msk [vmem:[#allocation2 + $0xc] sm:$0xf] %vm307_vm3, %v305_v20 }
  0xb8   : > { %v333_v22 = vmul.f32 %v327_v21, %v314_v19  ;;  %v329_v43 = vsel %vm328_vm7, %v327_v21, %v326_v18 }
  0xb9   : > { %v382_v24 = vpop.permute.xlu1 %381 }
  0xba   : > { %v313_v23 = vld [vmem:[#allocation2] sm:$0xff]  ;;  %v409_v26 = vpop.permute.xlu0 %408  ;;  %v383_v27 = vrot.slane %v382_v24, 4  ;;  %341 = vrot.lane.b32.xlu1 %v333_v22, %s947_s16 }
  0xbb   : > { %358 = vrot.lane.b32.xlu0 %v313_v23, %s948_s17  ;;  %v410_v29 = vrot.slane %v409_v26, 4  ;;  %v332_v44 = vmul.f32 %v329_v43, %v313_v23  ;;  %v354_v45 = vcombine.low %v313_v23, %v313_v23 }
  0xbc   : > { %v389_v28 = vmul.f32 %v383_v27, %v370_v25  ;;  %v385_v46 = vsel %vm384_vm8, %v383_v27, %v382_v24 }
  0xbd   : > { %v468_v30 = vpop.permute.xlu1 %467  ;;  %v416_v37 = vmul.f32 %v410_v29, %v407_v32  ;;  %v412_v40 = vsel %vm411_vm6, %v410_v29, %v409_v26  ;;  %v388_v49 = vmul.f32 %v385_v46, %v313_v23  ;;  %v336_v61 = vcombine.high %v332_v44, %v332_v44 }
  0xbe   : > { %v442_v31 = vpop.permute.xlu0 %441  ;;  %v469_v33 = vrot.slane %v468_v30, 4  ;;  %397 = vrot.lane.b32.xlu1 %v389_v28, %s945_s28  ;;  %v415_v41 = vmul.f32 %v412_v40, %v313_v23  ;;  %v466_v48 = vld [vmem:[#allocation2 + $0xc] sm:$0xf] }
  0xbf   : > { %v443_v34 = vrot.slane %v442_v31, 4  ;;  %v420_v42 = vcombine.low %v416_v37, %v416_v37  ;;  %v824_v53 = vld [vmem:[#allocation2 + $0xc] ss:$0 sps:$4 sm:$0xff]   ;;  %v392_v63 = vcombine.high %v388_v49, %v388_v49 }
  0xc0   : > { %v470_v35 = vsel %vm399_vm4, %v469_v33, %v468_v30  ;;  %v474_v50 = vmul.f32 %v469_v33, %v466_v48  ;;  %v440_v58 = vld [vmem:[#allocation2 + $0xc] sm:$0xf]  ;;  %v419_v60 = vcombine.low %v415_v41, %v415_v41 }
  0xc1   : > { %v444_v36 = vsel %vm427_vm5, %v443_v34, %v442_v31  ;;  %v473_v38 = vmul.f32 %v470_v35, %v1108_v7  ;;  %v512_v47 = vpop.permute.xlu1 %511  ;;  %v448_v59 = vmul.f32 %v443_v34, %v440_v58  ;;  %v510_v1 = vld [vmem:[#allocation2 + $0xc] sm:$0xf] }
  0xc2   : > { %v447_v39 = vmul.f32 %v444_v36, %v1108_v7  ;;  %v513_v51 = vrot.slane %v512_v47, 4  ;;  %v499_v6 = vpop.permute.xlu0 %498 }
  0xc3   : > { %478 = vrot.lane.b32.xlu1 %v473_v38, %s943_s27  ;;  %v477_v54 = vcombine.high %v473_v38, %v473_v38  ;;  %v452_v62 = vcombine.low %v448_v59, %v448_v59 }
  0xc4   : > { %455 = vrot.lane.b32.xlu0 %v447_v39, %s944_s29  ;;  %v514_v52 = vsel %vm343_vm9, %v513_v51, %v512_v47  ;;  %v451_v57 = vcombine.low %v447_v39, %v447_v39  ;;  %v518_v2 = vmul.f32 %v513_v51, %v510_v1 }
  0xc5   : > { %v517_v56 = vmul.f32 %v514_v52, %v1108_v7  ;;  %v361_v7 = vpop.permute.xlu1 %360 }
  0xc7   : > { %425 = vrot.lane.b32.xlu1 %v420_v42, %s946_s14  ;;  %v521_v3 = vcombine.high %v517_v56, %v517_v56 }
  0xc8   : > { %423 = vrot.lane.b32.xlu0 %v415_v41, %s946_s14 }
  0xcb   : > { %356 = vrot.lane.b32.xlu1 %v354_v45, %s948_s17 }
  0xcc   : > { %337 = vrot.lane.b32.xlu0 %v332_v44, %s947_s16 }
  0xcf   : > { %482 = vrot.lane.b32.xlu1 %v474_v50, %s943_s27 }
  0xd0   : > { %393 = vrot.lane.b32.xlu0 %v388_v49, %s945_s28 }
  0xd3   : > { %500 = vrot.lane.b32.xlu1 %v824_v53, %s941_s9 }
  0xd4   : > { %480 = vrot.lane.b32.xlu0 %v477_v54, %s943_s27 }
  0xd7   : > { %522 = vrot.lane.b32.xlu1 %v517_v56, %s942_s15 }
  0xd8   : > { %453 = vrot.lane.b32.xlu0 %v451_v57, %s944_s29 }
  0xdb   : > { %421 = vrot.lane.b32.xlu1 %v419_v60, %s946_s14 }
  0xdc   : > { %339 = vrot.lane.b32.xlu0 %v336_v61, %s947_s16  ;;  %s950_s16 = smov [#allocation7]  }
  0xdd   : > { %s859_s17 = sshll.u32 %s950_s16, 4  ;;  %s860_s17 = int_to_ptr.vmem [resolvable:$false] %s859_s17 }
  0xde   : > { %s861_s24 = scalar_lea.vmem %s860_s17, 512 }
  0xdf   : > { %457 = vrot.lane.b32.xlu1 %v452_v62, %s944_s29 }
  0xe0   : > { %395 = vrot.lane.b32.xlu0 %v392_v63, %s945_s28  ;;  %v534_v63 = vld [vmem:[%s1237_s2] sm:$0xf]  ;;  %s1186_s28 = scalar_lea.hbm %s1240_s5, %s749_s12 }
  0xe3   : > { %526 = vrot.lane.b32.xlu1 %v518_v2, %s942_s15 }
  0xe4   : > { %496 = vrot.lane.b32.xlu0 %v494_v0, %s941_s9  ;;  %s738_s9 = sshll.u32 %s1092_s25, 4 }
  0xe5   : > { %s279_s13 = scalar_lea.vmem [#allocation7], %s738_s9 }
  0xe8   : > { %524 = vrot.lane.b32.xlu0 %v521_v3, %s942_s15  ;;  %s630_s15 = sshll.u32 %s279_s13, 4  ;;  %s1188_s15 = int_to_ptr.vmem [resolvable:$true] %s630_s15 }
  0xe9   : > { %s855_s14 = scalar_lea.vmem %s1188_s15, 256  ;;  %p862_p13 = scmp.lt.s32.totalorder %s1188_s15, %s860_s17 }
  0xea   : > { %p856_p8 = scmp.ne.s32.totalorder %s1188_s15, %s855_s14  ;;  %p863_p3 = scmp.lt.s32.totalorder %s861_s24, %s855_s14 }
  0xec   : > { %554 = vperm.xlu0 %822, %v551_v5   ;;  %p857_p0 = pnand %p856_p8, %p1249_p11  ;;  %p864_p6 = por %p863_p3, %p862_p13 }
  0xee   : > { %p858_p7 = pneg %p857_p0 }
  0xf0   : > { %p865_p4 = pnand %p864_p6, %p858_p7 }
 0x12c   : > { %v342_v9 = vpop.permute.xlu1 %341 }
 0x12d   : > { %v359_v8 = vpop.permute.xlu0 %358 }
 0x12e   : > { %v364_v10 = vsel %vm362_vm10, %v359_v8, %v361_v7 }
 0x12f   : > { %368 = vst [vmem:[#allocation3 + $0x8] sm:$0xf0] %v364_v10 }
 0x130   : > { %v398_v11 = vpop.permute.xlu1 %397 }
 0x135   : > { %v479_v13 = vpop.permute.xlu1 %478 }
 0x136   : > { %v456_v12 = vpop.permute.xlu0 %455 }
 0x139   : > { %v426_v15 = vpop.permute.xlu1 %425 }
 0x13a   : > { %v424_v14 = vpop.permute.xlu0 %423 }
 0x13b   : > { %v429_v16 = vsel %vm427_vm5, %v424_v14, %v426_v15 }
 0x13c   : > { %433 = vst [vmem:[#allocation3 + $0x18] sm:$0xf0] %v429_v16 }
 0x13d   : > { %v357_v17 = vpop.permute.xlu1 %356 }
 0x13e   : > { %v338_v18 = vpop.permute.xlu0 %337  ;;  %v363_v19 = vsel %vm362_vm10, %v357_v17, %v359_v8 }
 0x13f   : > { %367 = vst [vmem:[#allocation3] sm:$0xf0] %v363_v19 }
 0x141   : > { %v483_v20 = vpop.permute.xlu1 %482 }
 0x142   : > { %v394_v21 = vpop.permute.xlu0 %393 }
 0x145   : > { %v501_v22 = vpop.permute.xlu1 %500 }
 0x146   : > { %v481_v23 = vpop.permute.xlu0 %480  ;;  %v504_v24 = vsel %vm502_vm11, %v499_v6, %v501_v22 }
 0x147   : > { %v484_v25 = vsel %vm384_vm8, %v479_v13, %v481_v23  ;;  %v485_v26 = vsel %vm384_vm8, %v481_v23, %v483_v20  ;;  %508 = vst [vmem:[#allocation3 + $0x38] sm:$0xf0] %v504_v24 }
 0x148   : > { %488 = vst [vmem:[#allocation3 + $0x30] sm:$0xf] %v484_v25  ;;  %489 = vst [vmem:[#allocation3 + $0x38] sm:$0xf] %v485_v26 }
 0x149   : > { %v523_v27 = vpop.permute.xlu1 %522 }
 0x14a   : > { %v454_v28 = vpop.permute.xlu0 %453 }
 0x14b   : > { %v459_v29 = vsel %vm411_vm6, %v454_v28, %v456_v12 }
 0x14c   : > { %463 = vst [vmem:[#allocation3 + $0x20] sm:$0xf0] %v459_v29 }
 0x14d   : > { %v422_v30 = vpop.permute.xlu1 %421 }
 0x14e   : > { %v340_v31 = vpop.permute.xlu0 %339  ;;  %v428_v32 = vsel %vm427_vm5, %v422_v30, %v424_v14 }
 0x14f   : > { %v344_v33 = vsel %vm343_vm9, %v338_v18, %v340_v31  ;;  %v345_v34 = vsel %vm343_vm9, %v340_v31, %v342_v9  ;;  %432 = vst [vmem:[#allocation3 + $0x10] sm:$0xf0] %v428_v32  ;;  %v542_v53 = vld [vmem:[#allocation3 + $0x38] sm:$0xff] }
 0x150   : > { %348 = vst [vmem:[#allocation3] sm:$0xf] %v344_v33  ;;  %349 = vst [vmem:[#allocation3 + $0x8] sm:$0xf] %v345_v34 }
 0x151   : > { %v458_v35 = vpop.permute.xlu1 %457 }
 0x152   : > { %v396_v36 = vpop.permute.xlu0 %395  ;;  %v460_v37 = vsel %vm411_vm6, %v456_v12, %v458_v35 }
 0x153   : > { %v400_v38 = vsel %vm399_vm4, %v394_v21, %v396_v36  ;;  %v401_v39 = vsel %vm399_vm4, %v396_v36, %v398_v11  ;;  %464 = vst [vmem:[#allocation3 + $0x28] sm:$0xf0] %v460_v37  ;;  %v539_v55 = vld [vmem:[#allocation3 + $0x20] sm:$0xff] }
 0x154   : > { %404 = vst [vmem:[#allocation3 + $0x10] sm:$0xf] %v400_v38  ;;  %405 = vst [vmem:[#allocation3 + $0x18] sm:$0xf] %v401_v39 }
 0x155   : > { %v527_v42 = vpop.permute.xlu1 %526 }
 0x156   : > { %v497_v40 = vpop.permute.xlu0 %496 }
 0x157   : > { %v503_v41 = vsel %vm502_vm11, %v497_v40, %v499_v6  ;;  %v536_v44 = vld [vmem:[#allocation3 + $0x8] sm:$0xff]  ;;  %v535_v45 = vld [vmem:[#allocation3] sm:$0xff] }
 0x158   : > { %507 = vst [vmem:[#allocation3 + $0x30] sm:$0xf0] %v503_v41 }
 0x15a   : > { %v525_v43 = vpop.permute.xlu0 %524  ;;  %v540_v50 = vld [vmem:[#allocation3 + $0x28] sm:$0xff] }
 0x15b   : > { %v528_v46 = vsel %vm328_vm7, %v523_v27, %v525_v43  ;;  %v529_v47 = vsel %vm328_vm7, %v525_v43, %v527_v42  ;;  %v538_v48 = vld [vmem:[#allocation3 + $0x18] sm:$0xff]  ;;  %v537_v49 = vld [vmem:[#allocation3 + $0x10] sm:$0xff]  ;;  %v548_v54 = vpack.c.bf16 %v542_v53, %v540_v50 }
 0x15c   : > { %532 = vst [vmem:[#allocation3 + $0x40] sm:$0xf] %v528_v46  ;;  %533 = vst [vmem:[#allocation3 + $0x48] sm:$0xf] %v529_v47  ;;  %v546_v51 = vpack.c.bf16 %v538_v48, %v536_v44  ;;  %v545_v52 = vpack.c.bf16 %v537_v49, %v535_v45 }
 0x15e   : > { %568 = vmatprep.subr.bf16.mxu0 %v546_v51 }
 0x15f   : > { %569 = vmatpush1.bf16.msra.mxu0 %v545_v52  ;;  %v541_v56 = vld [vmem:[#allocation3 + $0x30] sm:$0xff] }
 0x160   : > { %570 = vmatprep.subr.bf16.mxu0 %v548_v54  ;;  %v547_v57 = vpack.c.bf16 %v541_v56, %v539_v55 }
 0x163   : > { %571 = vmatpush1.bf16.msra.mxu0 %v547_v57  ;;  %v544_v58 = vld [vmem:[#allocation3 + $0x48] sm:$0xf]  ;;  %v543_v59 = vld [vmem:[#allocation3 + $0x40] sm:$0xf] }
 0x164   : > { %v550_v60 = vpack.c.bf16 %v544_v58, %v544_v58  ;;  %v549_v61 = vpack.c.bf16 %v543_v59, %v543_v59 }
 0x166   : > { %741 = vmatprep.subr.msk.bf16.mxu0 %vm561_vm12, %v550_v60  ;;  %v563_v62 = vsel %vm561_vm12, %v549_v61, 0 }
 0x167   : > { %573 = vmatpush1.bf16.msra.mxu0 %v563_v62 }
 0x16a   : > { %742 = vmatmul.mubr.msk.bf16.vlgmr.msra.gmra.mrb[0].mxu0 %vm557_vm13, %v534_v63 }
 0x16b   : > { %v555_v0 = vpop.permute.xlu0 %554 }
 0x23d   : > { %v602_v1 = vpop.f32.mrb[0].mxu0 }
 0x23e   : > { %v603_v2 = vadd.f32 %v602_v1, %v555_v0  ;;  %v604_v3 = vpop.f32.mrb[1].mxu0 }
 0x23f   : > { %v605_v4 = vadd.f32 %v604_v3, %v555_v0  ;;  %v606_v5 = vpop.f32.mrb[2].mxu0 }
 0x240   : > { %v609_v6 = vmax.f32 %v603_v2, 0.0  ;;  %v607_v7 = vpop.f32.mrb[3].mxu0 }
 0x241   : > { %v610_v8 = vmax.f32 %v605_v4, 0.0 }
 0x242   : > { %611 = vst [vmem:[%s279_s13] sm:$0xff] %v609_v6 }
 0x243   : > { %612 = vst [vmem:[%s279_s13 + $0x8] sm:$0xff] %v610_v8 }
 0x244   : > { %868 = shalt.err (!%p865_p4)
}
 0x245   : > { %s869_s25 = scalar_lea.hbm %s1186_s28, 256  ;;  %s873_s11 = scalar_lea.hbm %s1240_s5, 512 }
 0x246   : > { %p870_p10 = scmp.ne.s32.totalorder %s1186_s28, %s869_s25  ;;  %p874_p2 = scmp.lt.u32.totalorder %s1186_s28, %s1240_s5 }
 0x247   : > { %p875_p5 = scmp.lt.u32.totalorder %s873_s11, %s869_s25  ;;  %p877_p8 = scmp.lt.u32.totalorder %s869_s25, %s1186_s28 }
 0x248   : > { %p871_p12 = pnand %p870_p10, %p1249_p11 }
 0x249   : > { %p876_p9 = por %p875_p5, %p874_p2 }
 0x24a   : > { %p872_p1 = pneg %p871_p12 }
 0x24b   : > { %p878_p0 = por %p877_p8, %p876_p9 }
 0x24d   : > { %p879_p7 = pnand %p878_p0, %p872_p1 }
 0x24f   : > { %882 = shalt.err (!%p879_p7)
}
 0x250   : > { %752 = dma.vmem_to_hbm [thread:$0]  (%p1249_p11), %s1188_s15, 256, %s1186_s28, %s614_s21  }
 0x251 PF: > { %s642_s13 = sand.u32 1, %s917_s18   ;;  %p1250_p13 = scmp.ne.s32.totalorder %s1245_s8, 0 }
 0x252   : > { %p1251_p3 = scmp.ge.s32.totalorder %s937_s23, 2  ;;  %s643_s27 = scalar_lea.sflag [#allocation6], %s642_s13 }
 0x254   : > { %p759_p6 = pnand %p1251_p3, %p1250_p13 }
 0x256   : > { %912 = dma.done.wait (!%p759_p6), %s643_s27, 256  }
 0x257   : > { %914 = vsyncadd (!%p759_p6), %s643_s27, 4294967040  ;;  %s21_s23 = sadd.s32 1, %s937_s23   ;;  %s1252_s18 = smov %s921_s19 }
 0x258   : > { %p18_p4 = scmp.ge.s32.totalorder %s21_s23, 4   ;;  %s1253_s19 = smov %s925_s20 }
 0x259   : > { %s1254_s20 = smov %s1037_s7  ;;  %s1255_s21 = smov %s933_s22 }
 0x25a   : > { %s1256_s22 = smov %s1258_s26  ;;  %20 = sbr.rel (!%p18_p4) target bundleno = 6 (0x6), region = 89 }
 0x261   :  { %648 = vsyncpa [#allocation5], 1 }
 0x262   :  { %650 = vsyncpa [#allocation5 + $0x1], 1 }
 0x263   :  { %651 = vsyncpa [#allocation6], 1 }
 0x264   :  { %653 = vsyncpa [#allocation6 + $0x1], 1 }

</bundles_post_ra>
